<compile_context>
chip_gen: v5e
topology: v5e:2x2
jax: 0.10.0
libtpu: 0.0.40
codegen_flags: <defaults>
</compile_context>

<pallas_src>
import math

import numpy as np
import jax
import jax.numpy as jnp
from jax.experimental import pallas as pl
from jax.experimental.pallas import tpu as pltpu


def make_dct_matrix(patchsize):
    """Builds the (p*p, p*p) DCT basis exactly as Kernel_DCT does.

    Returned matrix K satisfies K[index2, index] == kernel[index2, index, 0, 0]
    of the torch module (out-channel index2 = i*p+j, in-channel index = u*p+v).
    """
    p = patchsize
    r1 = math.sqrt(1.0 / p)
    r2 = math.sqrt(2.0 / p)
    k = np.zeros((p * p, p * p), dtype=np.float32)
    for u in range(p):
        for v in range(p):
            index = u * p + v
            for i in range(p):
                _u = 2 * i + 1
                for j in range(p):
                    _v = 2 * j + 1
                    index2 = i * p + j
                    t = (math.cos(_u * u * math.pi / (2 * p))
                         * math.cos(_v * v * math.pi / (2 * p)))
                    t = t * r1 if u == 0 else t * r2
                    t = t * r1 if v == 0 else t * r2
                    k[index2, index] = t
    return k


def _vmem_limit_bytes():
    """Scoped-VMEM limit: 3/4 of physical VMEM (96 MiB on v5e/v6e, 48 MiB on v7x)."""
    cap = 64 << 20  # conservative fallback: v7x has 64 MiB per TensorCore
    try:
        info = pltpu.get_tpu_info()
        cap = int(getattr(info, "vmem_capacity_bytes", cap)) or cap
    except Exception:
        pass
    return (cap * 3) // 4


def _choose_tiles(N, C, Cout, HW, itemsize, budget_bytes):
    """Pick (Nb, T): batch block and spatial-lane tile for the DMA pipeline."""
    lane_bytes = (C + Cout) * itemsize          # in + out bytes per lane column per batch elem
    # Largest spatial tile whose double-buffered in+out tiles fit the budget (at Nb=1).
    max_t = budget_bytes // (2 * lane_bytes)
    max_t = max(128, (max_t // 128) * 128)      # lane tile must be a multiple of 128
    max_t = min(max_t, 32768)                   # diminishing returns past ~32K lanes
    if HW <= max_t:
        T = HW                                  # full-extent block (legal even if HW % 128 != 0)
    else:
        T = max_t
    # Coarsen the batch dim so each grid step moves at least ~1 MiB.
    per_batch = lane_bytes * T
    nb_budget = max(1, budget_bytes // (2 * per_batch))
    nb_target = max(1, -(-(1 << 20) // per_batch))
    Nb = int(max(1, min(N, nb_budget, nb_target, 64)))
    return Nb, T


def _adct_kernel(x_ref, w_ref, o_ref):
    # x_ref: (Nb, C, T)    batch block of channels x flattened-spatial (lane axis)
    # w_ref: (Cout, C)     folded weight: DCT basis * it_weights (done in the wrapper)
    # o_ref: (Nb, Cout, T)
    w = w_ref[...]                              # hoisted: loaded once per step
    for i in range(x_ref.shape[0]):             # static, small (Nb <= 64)
        o_ref[i] = jnp.dot(
            w, x_ref[i], preferred_element_type=jnp.float32
        ).astype(o_ref.dtype)


def adaptive_dct_trans(x, dct_mat, it_weights):
    """y = F.conv2d(x, dct_mat * it_weights) with 1x1 kernels (NCHW)."""
    N, C, H, W = x.shape
    Cout = dct_mat.shape[0]
    HW = H * W

    # Fold it_weights (shape (Cout,1,1,1) in the torch module) into the DCT matrix.
    # This is a <=64x64 array: doing it in the wrapper is free and removes one operand
    # plus a per-step broadcast multiply from the kernel.
    itw = jnp.reshape(it_weights, (Cout, 1))
    k0 = (dct_mat * itw).astype(x.dtype)        # (Cout, C)

    # Flatten spatial dims so the last axis is lane-dense.
    x2 = x.reshape(N, C, HW)

    vmem_limit = _vmem_limit_bytes()
    budget = (vmem_limit * 4) // 5              # headroom for weight tile / compiler scratch
    Nb, T = _choose_tiles(N, C, Cout, HW, x.dtype.itemsize, budget)

    grid = (pl.cdiv(N, Nb), pl.cdiv(HW, T))

    out = pl.pallas_call(
        _adct_kernel,
        out_shape=jax.ShapeDtypeStruct((N, Cout, HW), x.dtype),
        grid=grid,
        in_specs=[
            pl.BlockSpec((Nb, C, T), lambda n, t: (n, 0, t)),
            pl.BlockSpec((Cout, C), lambda n, t: (0, 0)),
        ],
        out_specs=pl.BlockSpec((Nb, Cout, T), lambda n, t: (n, 0, t)),
        compiler_params=pltpu.CompilerParams(
            dimension_semantics=("parallel", "parallel"),
            vmem_limit_bytes=int(vmem_limit),
        ),
    )(x2, k0)
    return out.reshape(N, Cout, H, W)


def ref_forward_numpy(x, dct_mat, it_weights):
    """Direct numpy transcription of adaptive_DCT_trans.forward."""
    k0 = (np.asarray(dct_mat, np.float32)
          * np.asarray(it_weights, np.float32).reshape(-1, 1))           # (Cout, C)
    return np.einsum("oc,nchw->nohw", k0, np.asarray(x, np.float32)).astype(np.float32)


if __name__ == "__main__":
    patchsize = 2                       # in_channels = out_channels = patchsize**2 = 4
    N, H, W = 2, 16, 16
    C = patchsize * patchsize

    key = jax.random.PRNGKey(0)
    x = jax.random.normal(key, (N, C, H, W), dtype=jnp.float32)

    dct_np = make_dct_matrix(patchsize)
    dct = jnp.asarray(dct_np)

    # nn.Parameter is initialized to ones; use a deterministic non-trivial value so the
    # it_weights scaling path is actually exercised (forward must hold for any values).
    itw_np = (1.0 + 0.25 * np.arange(C, dtype=np.float32)).reshape(C, 1, 1, 1)
    itw = jnp.asarray(itw_np)

    out = adaptive_dct_trans(x, dct, itw)
    out = jax.block_until_ready(out)

    ref = ref_forward_numpy(np.asarray(x), dct_np, itw_np)
    assert out.shape == ref.shape, (out.shape, ref.shape)
    np.testing.assert_allclose(np.asarray(out), ref, rtol=1e-5, atol=1e-5)

    # TODO(synk): self.ReLU is constructed but never used in the torch forward; not applied.
    print("KERNEL_OK")
</pallas_src>

<mosaic_0001>
module attributes {stable_mosaic.version = 11 : i64} {
  func.func @_adct_kernel(%arg0: i32, %arg1: i32, %arg2: memref<2x4x256xf32, #tpu.memory_space<vmem>>, %arg3: memref<4x4xf32, #tpu.memory_space<vmem>>, %arg4: memref<2x4x256xf32, #tpu.memory_space<vmem>>) attributes {dimension_semantics = [#tpu.dimension_semantics<parallel>, #tpu.dimension_semantics<parallel>], iteration_bounds = array<i64: 1, 1>, scalar_prefetch = 0 : i64, scratch_operands = 0 : i64, tpu.core_type = #tpu.core_type<tc>, window_params = [{transform_indices = @transform_0, window_bounds = array<i64: 2, 4, 256>}, {pipeline_mode = #tpu.pipeline_mode<synchronous>, transform_indices = @transform_1, window_bounds = array<i64: 4, 4>}, {transform_indices = @transform_2, window_bounds = array<i64: 2, 4, 256>}]} {
    %c0 = arith.constant 0 : index
    %c0_0 = arith.constant 0 : index
    %0 = vector.load %arg3[%c0, %c0_0] : memref<4x4xf32, #tpu.memory_space<vmem>>, vector<4x4xf32>
    %c0_1 = arith.constant 0 : index
    %c0_2 = arith.constant 0 : index
    %c0_3 = arith.constant 0 : index
    %1 = vector.load %arg2[%c0_1, %c0_2, %c0_3] : memref<2x4x256xf32, #tpu.memory_space<vmem>>, vector<1x4x256xf32>
    %2 = vector.shape_cast %1 : vector<1x4x256xf32> to vector<4x256xf32>
    %cst = arith.constant dense<0.000000e+00> : vector<4x256xf32>
    %3 = tpu.matmul %0, %2, %cst {dimension_numbers = #tpu.dot_dimension_numbers<[1], [0], [0], [1], [0, 0, 1, 1], [], []>} : vector<4x4xf32>, vector<4x256xf32>, vector<4x256xf32> -> vector<4x256xf32>
    %c0_4 = arith.constant 0 : index
    %c0_5 = arith.constant 0 : index
    %c0_6 = arith.constant 0 : index
    %4 = vector.load %arg4[%c0_4, %c0_5, %c0_6] : memref<2x4x256xf32, #tpu.memory_space<vmem>>, vector<1x4x256xf32>
    %5 = vector.shape_cast %4 : vector<1x4x256xf32> to vector<4x256xf32>
    %6 = vector.shape_cast %3 : vector<4x256xf32> to vector<1x4x256xf32>
    tpu.vector_store %arg4[%c0_4, %c0_5, %c0_6], %6 {strides = array<i32>} : memref<2x4x256xf32, #tpu.memory_space<vmem>>, vector<1x4x256xf32>,
    %c1 = arith.constant 1 : index
    %c0_7 = arith.constant 0 : index
    %c0_8 = arith.constant 0 : index
    %7 = vector.load %arg2[%c1, %c0_7, %c0_8] : memref<2x4x256xf32, #tpu.memory_space<vmem>>, vector<1x4x256xf32>
    %8 = vector.shape_cast %7 : vector<1x4x256xf32> to vector<4x256xf32>
    %cst_9 = arith.constant dense<0.000000e+00> : vector<4x256xf32>
    %9 = tpu.matmul %0, %8, %cst_9 {dimension_numbers = #tpu.dot_dimension_numbers<[1], [0], [0], [1], [0, 0, 1, 1], [], []>} : vector<4x4xf32>, vector<4x256xf32>, vector<4x256xf32> -> vector<4x256xf32>
    %c1_10 = arith.constant 1 : index
    %c0_11 = arith.constant 0 : index
    %c0_12 = arith.constant 0 : index
    %10 = vector.load %arg4[%c1_10, %c0_11, %c0_12] : memref<2x4x256xf32, #tpu.memory_space<vmem>>, vector<1x4x256xf32>
    %11 = vector.shape_cast %10 : vector<1x4x256xf32> to vector<4x256xf32>
    %12 = vector.shape_cast %9 : vector<4x256xf32> to vector<1x4x256xf32>
    tpu.vector_store %arg4[%c1_10, %c0_11, %c0_12], %12 {strides = array<i32>} : memref<2x4x256xf32, #tpu.memory_space<vmem>>, vector<1x4x256xf32>,
    return
  }
  func.func @transform_0(%arg0: i32, %arg1: i32) -> (i32, i32, i32) {
    %c0_i32 = arith.constant 0 : i32
    %c0_i32_0 = arith.constant 0 : i32
    return %arg0, %c0_i32, %arg1 : i32, i32, i32
  }
  func.func @transform_1(%arg0: i32, %arg1: i32) -> (i32, i32) {
    %c0_i32 = arith.constant 0 : i32
    %c0_i32_0 = arith.constant 0 : i32
    %c0_i32_1 = arith.constant 0 : i32
    return %c0_i32, %c0_i32_0 : i32, i32
  }
  func.func @transform_2(%arg0: i32, %arg1: i32) -> (i32, i32, i32) {
    %c0_i32 = arith.constant 0 : i32
    %c0_i32_0 = arith.constant 0 : i32
    return %arg0, %c0_i32, %arg1 : i32, i32, i32
  }
}

</mosaic_0001>

<bundles_post_ra>
// kernel: tpu_custom_call.1
= control target key start
LH: loop header
LB: loop body
LE: loop exit
PB: predicated region body
PF: predicated region fallthrough
CT: control target
= control target key end

     0   :  { %7 = vsyncpa [#allocation3], 0  ;;  %s312_s0 = inlined_call_operand.hbm [shape: f32[2,4,256], index: 0, kind: input, shape index: {}]   ;;  %s313_s1 = inlined_call_operand.hbm [shape: f32[4,4], index: 1, kind: input, shape index: {}]   ;;  %s314_s2 = inlined_call_operand.hbm [shape: f32[2,4,256], index: 2, kind: output, shape index: {}]  }
   0x1   :  { %8 = vsyncpa [#allocation6], 0 }
   0x2   :  { %9 = vsyncpa [#allocation4], 0  ;;  %s14_s11 = sshll.u32 %s312_s0, 4  ;;  %s271_s12 = smov [#allocation2]   ;;  %s15_s11 = int_to_ptr.hbm [resolvable:$true] %s14_s11 }
   0x3   :  { %s16_s13 = sshll.u32 %s271_s12, 4  ;;  %s28_s16 = sshll.u32 %s313_s1, 4  ;;  %s17_s13 = int_to_ptr.vmem [resolvable:$true] %s16_s13  ;;  %s29_s16 = int_to_ptr.hbm [resolvable:$true] %s28_s16 }
   0x4   :  { %s272_s17 = smov 128   ;;  %s273_s18 = smov 8  }
   0x5   :  { %22 = dma.hbm_to_vmem [thread:$0]  %s15_s11, 256, %s17_s13, [#allocation3], %s272_s17, %s272_s17, %s273_s18  }
   0x6   :  { %s274_s19 = smov [#allocation5]  }
   0x7   :  { %s30_s20 = sshll.u32 %s274_s19, 4  ;;  %s31_s20 = int_to_ptr.vmem [resolvable:$true] %s30_s20 }
   0x8   :  { %33 = dma.hbm_to_vmem [thread:$0]  %s29_s16, 64, %s31_s20, [#allocation6]  }
   0x9   :  { %265 = dma.done.wait [#allocation3], 256  }
   0xa   :  { %266 = vsyncadd [#allocation3], 4294967040 }
   0xb   :  { %267 = dma.done.wait [#allocation6], 64  }
   0xc   :  { %268 = vsyncadd [#allocation6], 4294967232  ;;  %v43_v0 = vld [vmem:[#allocation2] sm:$0xff]  ;;  %v104_v1 = vld [vmem:[#allocation2 + $0x8] sm:$0xff]  ;;  %vm52_vm0 = vcmask 1043456   ;;  %vm48_vm1 = vcmask 31744  }
   0xd   :  { %45 = vst [vmem:[#allocation1] ss:$2 sm:$0xff] %v43_v0  ;;  %v42_v4 = vld [vmem:[#allocation5] sm:$0xf]  ;;  %s275_s0 = smov [#allocation7]   ;;  %s166_s23 = sshll.u32 %s314_s2, 4  ;;  %s167_s23 = int_to_ptr.hbm [resolvable:$true] %s166_s23 }
   0xe   :  { %s164_s1 = sshll.u32 %s275_s0, 4  ;;  %s165_s1 = int_to_ptr.vmem [resolvable:$true] %s164_s1 }
  0x14   :  { %v46_v2 = vld.sshfl [vmem:[#allocation1] sm:$0xff pattern:$0x75316420]  ;;  %v47_v3 = vld.sshfl [vmem:[#allocation1 + $0x8] sm:$0xff pattern:$0x75316420] }
  0x15   :  { %106 = vst [vmem:[#allocation1] ss:$2 sm:$0xff] %v104_v1  ;;  %182 = vmatpush.msk.msra.mxu1 %vm52_vm0, %v47_v3  ;;  %180 = vmatpush.msk.msra.mxu0 %vm52_vm0, %v46_v2 }
  0x16   :  { %183 = vmatmul.msk.f32.vlgmr.msra.gmra.mxu1 %vm48_vm1, %v42_v4  ;;  %181 = vmatmul.msk.f32.vlgmr.msra.gmra.mxu0 %vm48_vm1, %v42_v4 }
  0x1c   :  { %v108_v5 = vld.sshfl [vmem:[#allocation1 + $0x8] sm:$0xff pattern:$0x75316420]  ;;  %v107_v6 = vld.sshfl [vmem:[#allocation1] sm:$0xff pattern:$0x75316420] }
  0x1d   :  { %186 = vmatpush.msk.msra.mxu3 %vm52_vm0, %v108_v5  ;;  %184 = vmatpush.msk.msra.mxu2 %vm52_vm0, %v107_v6 }
  0x1e   :  { %187 = vmatmul.msk.f32.vlgmr.msra.gmra.mxu3 %vm48_vm1, %v42_v4  ;;  %185 = vmatmul.msk.f32.vlgmr.msra.gmra.mxu2 %vm48_vm1, %v42_v4 }
  0x93   :  { %v94_v7 = vpop.f32.mrf.mxu1  ;;  %v74_v8 = vpop.f32.mrf.mxu0 }
  0x94   :  { %v99_v9 = vrot.slane %v94_v7, 4 }
  0x96   :  { %v100_v10 = vsel %vm52_vm0, %v74_v8, %v99_v9 }
  0x97   :  { %102 = vst [vmem:[#allocation7] sm:$0xff] %v100_v10 }
  0xa1   :  { %v150_v11 = vpop.f32.mrf.mxu3  ;;  %v130_v12 = vpop.f32.mrf.mxu2 }
  0xa2   :  { %v155_v13 = vrot.slane %v150_v11, 4 }
  0xa4   :  { %v156_v14 = vsel %vm52_vm0, %v130_v12, %v155_v13 }
  0xa5   :  { %159 = vst [vmem:[#allocation7 + $0x8] sm:$0xff] %v156_v14 }
  0xa6   :  { %172 = dma.vmem_to_hbm [thread:$0]  %s165_s1, 256, %s167_s23, [#allocation4], %s272_s17, %s272_s17, %s273_s18  }
  0xa7   :  { %269 = dma.done.wait [#allocation4], 256  }
  0xa8   :  { %270 = vsyncadd [#allocation4], 4294967040 }
  0xa9   :  { %177 = vsyncpa [#allocation3], 1 }
  0xaa   :  { %178 = vsyncpa [#allocation6], 1 }
  0xab   :  { %179 = vsyncpa [#allocation4], 1 }

</bundles_post_ra>
